<compile_context>
chip_gen: v5e
topology: v5e:2x2
jax: 0.10.0
libtpu: 0.0.40
codegen_flags: <defaults>
</compile_context>

<pallas_src>
import math

import jax
import jax.numpy as jnp
from jax.experimental import pallas as pl
from jax.experimental.pallas import tpu as pltpu


NEG_INF = -1e30  # pad-lane bias so padded logits contribute exp(..)=0 to softmax


# ----------------------------- Pallas kernel ------------------------------- #
def gru_lm_decode_kernel(tok_ref, h0_ref, w_gates_ref, w_out_ref,
                         logp_ref, h_last_ref, h_scr):
    """One GRU decode step per grid iteration (grid = (T,)).

    PyTorch GRU semantics (torch.nn.GRU, one layer, batch_first):
        r  = sigmoid(x W_ir^T + b_ir + h W_hr^T + b_hr)
        z  = sigmoid(x W_iz^T + b_iz + h W_hz^T + b_hz)
        n  = tanh  (x W_in^T + b_in + r * (h W_hn^T + b_hn))
        h' = (1 - z) * n + z * h

    Single fused gate matmul: a = [onehot(tok) | h | 1]  (B, O+H+1)
        g = a @ W_gates, lane packing of g (4H lanes, 128 for H=32):
        cols [0,   H) : x W_ir + h W_hr + (b_ir + b_hr)   -> r pre-activation
        cols [H,  2H) : x W_iz + h W_hz + (b_iz + b_hz)   -> z pre-activation
        cols [2H, 3H) : x W_in + b_in
        cols [3H, 4H) : h W_hn + b_hn

    Output projection: [h' | 1] @ W_out_aug (bias + -1e30 pad folded into the
    last weight row) followed by a 128-lane log-softmax.
    """
    t = pl.program_id(0)
    B, H = h_scr.shape
    O = w_gates_ref.shape[0] - H - 1

    # Hidden state lives in VMEM scratch across the whole grid.
    @pl.when(t == 0)
    def _():
        h_scr[...] = h0_ref[...]

    tok = tok_ref[0]                                      # (B, 1) int32 token ids
    h = h_scr[...]                                        # (B, H) carried hidden
    ones = jnp.ones((B, 1), jnp.float32)

    # Embedding gather folded into the gate matmul via a one-hot row block.
    col = jax.lax.broadcasted_iota(jnp.int32, (B, O), 1)
    onehot = jnp.where(col == tok, 1.0, 0.0)              # (B, O) f32

    a = jnp.concatenate([onehot, h, ones], axis=1)        # (B, O+H+1)
    g = jnp.dot(a, w_gates_ref[...],
                preferred_element_type=jnp.float32)       # (B, 4H) — one MXU matmul

    r = jax.nn.sigmoid(g[:, 0:H])
    z = jax.nn.sigmoid(g[:, H:2 * H])
    n = jnp.tanh(g[:, 2 * H:3 * H] + r * g[:, 3 * H:4 * H])
    h_new = (1.0 - z) * n + z * h                         # (B, H)

    # Output projection into a lane-dense 128-wide tile; bias (and -1e30 pad
    # bias) folded into the last weight row via the ones lane.
    h_aug = jnp.concatenate([h_new, ones], axis=1)        # (B, H+1)
    logits = jnp.dot(h_aug, w_out_ref[...],
                     preferred_element_type=jnp.float32)  # (B, O_pad)
    m = jnp.max(logits, axis=-1, keepdims=True)
    shifted = logits - m
    lse = jnp.log(jnp.sum(jnp.exp(shifted), axis=-1, keepdims=True))

    logp_ref[0] = shifted - lse                           # unmasked 128-lane store
    h_scr[...] = h_new                                    # carry to next step
    h_last_ref[...] = h_new                               # constant index -> flushed once


# ------------------------------ jitted forward ------------------------------ #
def _forward(params, inputs, hidden):
    """inputs: (B, T) int32 token ids; hidden: (1, B, H) float32.
    Returns (log-probs (B, T, O), new hidden (1, B, H)).  T==1 matches the
    PyTorch module's documented contract; T>1 is a fused decode loop."""
    B, T = inputs.shape
    H = hidden.shape[-1]
    K, GW = params["w_gates"].shape          # K = O + H + 1, GW = 4H
    OP = params["w_out_aug"].shape[1]
    O = K - H - 1

    tok = jnp.transpose(inputs, (1, 0)).reshape(T, B, 1).astype(jnp.int32)
    h0 = hidden[0]                           # (B, H)

    logp_pad, h_last = pl.pallas_call(
        gru_lm_decode_kernel,
        out_shape=(jax.ShapeDtypeStruct((T, B, OP), jnp.float32),
                   jax.ShapeDtypeStruct((B, H), jnp.float32)),
        grid=(T,),
        in_specs=[
            pl.BlockSpec((1, B, 1), lambda t: (t, 0, 0)),      # tokens, streamed
            pl.BlockSpec((B, H), lambda t: (0, 0)),            # h0, fetched once
            pl.BlockSpec((K, GW), lambda t: (0, 0)),           # gate weights, resident
            pl.BlockSpec((H + 1, OP), lambda t: (0, 0)),       # out proj, resident
        ],
        out_specs=(
            pl.BlockSpec((1, B, OP), lambda t: (t, 0, 0)),     # per-step log-probs
            pl.BlockSpec((B, H), lambda t: (0, 0)),            # final hidden
        ),
        scratch_shapes=[pltpu.VMEM((B, H), jnp.float32)],      # carried hidden state
        compiler_params=pltpu.CompilerParams(
            dimension_semantics=("arbitrary",)),               # time axis is sequential
    )(tok, h0, params["w_gates"], params["w_out_aug"])

    logp = jnp.transpose(logp_pad, (1, 0, 2))[:, :, :O]        # (B, T, O) contract
    return logp, h_last[None, :, :]


# ------------------------------ Model wrapper ------------------------------ #
class GRULanguageModelPallas:
    """JAX/Pallas port of the PyTorch GRULanguageModel forward pass."""

    def __init__(self, hidden_size=32, output_size=16, key=jax.random.PRNGKey(42)):
        self.hidden_size = H = hidden_size
        self.output_size = O = output_size

        keys = jax.random.split(key, 6)
        k = 1.0 / math.sqrt(H)

        # nn.Embedding(output_size, hidden_size): N(0, 1)
        emb = jax.random.normal(keys[0], (O, H), dtype=jnp.float32)
        # nn.GRU weights: U(-1/sqrt(H), 1/sqrt(H)); PyTorch stores (3H, H) [r|z|n]
        w_ih = jax.random.uniform(keys[1], (3 * H, H), jnp.float32, -k, k)
        w_hh = jax.random.uniform(keys[2], (3 * H, H), jnp.float32, -k, k)
        b_ih = jax.random.uniform(keys[3], (3 * H,), jnp.float32, -k, k)
        b_hh = jax.random.uniform(keys[4], (3 * H,), jnp.float32, -k, k)
        # nn.Linear(hidden_size, output_size): U(-1/sqrt(H), 1/sqrt(H))
        ko1, ko2 = jax.random.split(keys[5])
        w_out = jax.random.uniform(ko1, (O, H), jnp.float32, -k, k)
        b_out = jax.random.uniform(ko2, (O,), jnp.float32, -k, k)

        # Faithful per-gate views, kept for the pure-JAX reference.
        self.embedding = emb
        self.w_ir, self.w_iz, self.w_in = w_ih[0:H].T, w_ih[H:2 * H].T, w_ih[2 * H:].T
        self.w_hr, self.w_hz, self.w_hn = w_hh[0:H].T, w_hh[H:2 * H].T, w_hh[2 * H:].T
        self.b_ir, self.b_iz, self.b_in = b_ih[0:H][None], b_ih[H:2 * H][None], b_ih[2 * H:][None]
        self.b_hr, self.b_hz, self.b_hn = b_hh[0:H][None], b_hh[H:2 * H][None], b_hh[2 * H:][None]
        self.w_out = w_out.T                              # (H, O)
        self.b_out = b_out[None]                          # (1, O)

        # ---- wrapper-side packing into the two fused kernel operands ----
        zH = jnp.zeros((H, H), jnp.float32)
        wi_cat = jnp.concatenate([self.w_ir, self.w_iz, self.w_in, zH], axis=1)   # (H, 4H)
        wh_cat = jnp.concatenate([self.w_hr, self.w_hz, zH, self.w_hn], axis=1)   # (H, 4H)
        # Fold the embedding gather into the gate matmul: onehot @ (emb @ Wi_cat)
        e_cat = jnp.dot(emb, wi_cat, precision=jax.lax.Precision.HIGHEST)         # (O, 4H)
        b_cat = jnp.concatenate([self.b_ir + self.b_hr,
                                 self.b_iz + self.b_hz,
                                 self.b_in, self.b_hn], axis=1)                   # (1, 4H)
        # Single gate operand: [e_cat ; wh_cat ; b_cat]  (O+H+1, 4H)
        w_gates = jnp.concatenate([e_cat, wh_cat, b_cat], axis=0)

        OP = ((O + 127) // 128) * 128                     # lane-dense padded output width
        w_out_rows = jnp.zeros((H, OP), jnp.float32).at[:, :O].set(self.w_out)
        b_out_row = jnp.full((1, OP), NEG_INF, jnp.float32).at[:, :O].set(self.b_out)
        # Output operand with bias (and -1e30 pad bias) folded as the last row.
        w_out_aug = jnp.concatenate([w_out_rows, b_out_row], axis=0)              # (H+1, OP)

        self.params = dict(w_gates=w_gates, w_out_aug=w_out_aug)
        self._jit_forward = jax.jit(_forward)

    def __call__(self, inputs, hidden):
        return self._jit_forward(self.params, inputs, hidden)

    # Pure-JAX reference (same math as the PyTorch module) for correctness checking.
    def reference(self, inputs, hidden):
        h = hidden[0]
        outs = []
        for t in range(inputs.shape[1]):
            x = jnp.take(self.embedding, inputs[:, t], axis=0)
            r = jax.nn.sigmoid(x @ self.w_ir + self.b_ir + h @ self.w_hr + self.b_hr)
            z = jax.nn.sigmoid(x @ self.w_iz + self.b_iz + h @ self.w_hz + self.b_hz)
            n = jnp.tanh(x @ self.w_in + self.b_in + r * (h @ self.w_hn + self.b_hn))
            h = (1.0 - z) * n + z * h
            logits = h @ self.w_out + self.b_out
            outs.append(jax.nn.log_softmax(logits, axis=-1))
        return jnp.stack(outs, axis=1), h[None, :, :]


# ---------------------------------- main ----------------------------------- #
if __name__ == "__main__":
    B, H, O = 8, 32, 16

    model = GRULanguageModelPallas(hidden_size=H, output_size=O,
                                   key=jax.random.PRNGKey(42))

    key = jax.random.PRNGKey(0)
    k_tok, k_seq = jax.random.split(key)

    # --- single-step forward: the module's documented contract ---
    inputs = jax.random.randint(k_tok, (B, 1), 0, O, dtype=jnp.int32)   # (B, 1)
    hidden = jnp.zeros((1, B, H), dtype=jnp.float32)                    # (1, B, H)

    out, h_new = model(inputs, hidden)
    out = jax.block_until_ready(out)
    h_new = jax.block_until_ready(h_new)

    ref_out, ref_h = model.reference(inputs, hidden)
    assert out.shape == (B, 1, O) and h_new.shape == (1, B, H)
    assert jnp.allclose(out, ref_out, atol=1e-4, rtol=1e-4), \
        float(jnp.max(jnp.abs(out - ref_out)))
    assert jnp.allclose(h_new, ref_h, atol=1e-4, rtol=1e-4), \
        float(jnp.max(jnp.abs(h_new - ref_h)))

    # --- multi-step decode: T tokens in ONE pallas_call (resident weights,
    #     VMEM-carried hidden) — the amortized path from the perf review ---
    T = 8
    seq = jax.random.randint(k_seq, (B, T), 0, O, dtype=jnp.int32)      # (B, T)
    out_seq, h_seq = model(seq, hidden)
    out_seq = jax.block_until_ready(out_seq)
    h_seq = jax.block_until_ready(h_seq)

    ref_out_seq, ref_h_seq = model.reference(seq, hidden)
    assert out_seq.shape == (B, T, O) and h_seq.shape == (1, B, H)
    assert jnp.allclose(out_seq, ref_out_seq, atol=5e-4, rtol=5e-4), \
        float(jnp.max(jnp.abs(out_seq - ref_out_seq)))
    assert jnp.allclose(h_seq, ref_h_seq, atol=5e-4, rtol=5e-4), \
        float(jnp.max(jnp.abs(h_seq - ref_h_seq)))

    print("KERNEL_OK")
</pallas_src>

<mosaic_0001>
module attributes {stable_mosaic.version = 11 : i64} {
  func.func @gru_lm_decode_kernel(%arg0: i32, %arg1: memref<1x8x1xi32, #tpu.memory_space<vmem>>, %arg2: memref<8x32xf32, #tpu.memory_space<vmem>>, %arg3: memref<49x128xf32, #tpu.memory_space<vmem>>, %arg4: memref<33x128xf32, #tpu.memory_space<vmem>>, %arg5: memref<1x8x128xf32, #tpu.memory_space<vmem>>, %arg6: memref<8x32xf32, #tpu.memory_space<vmem>>, %arg7: memref<8x32xf32, #tpu.memory_space<vmem>>) attributes {dimension_semantics = [#tpu.dimension_semantics<arbitrary>], iteration_bounds = array<i64: 1>, scalar_prefetch = 0 : i64, scratch_operands = 1 : i64, tpu.core_type = #tpu.core_type<tc>, window_params = [{transform_indices = @transform_0, window_bounds = array<i64: 1, 8, 1>}, {pipeline_mode = #tpu.pipeline_mode<synchronous>, transform_indices = @transform_1, window_bounds = array<i64: 8, 32>}, {pipeline_mode = #tpu.pipeline_mode<synchronous>, transform_indices = @transform_2, window_bounds = array<i64: 49, 128>}, {pipeline_mode = #tpu.pipeline_mode<synchronous>, transform_indices = @transform_3, window_bounds = array<i64: 33, 128>}, {transform_indices = @transform_4, window_bounds = array<i64: 1, 8, 128>}, {pipeline_mode = #tpu.pipeline_mode<synchronous>, transform_indices = @transform_5, window_bounds = array<i64: 8, 32>}]} {
    %c0_i32 = arith.constant 0 : i32
    %0 = arith.cmpi eq, %arg0, %c0_i32 : i32
    %1 = arith.extui %0 : i1 to i32
    %c0_i32_0 = arith.constant 0 : i32
    %2 = arith.cmpi ne, %1, %c0_i32_0 : i32
    scf.if %2 {
      %c0_25 = arith.constant 0 : index
      %c0_26 = arith.constant 0 : index
      %56 = vector.load %arg2[%c0_25, %c0_26] : memref<8x32xf32, #tpu.memory_space<vmem>>, vector<8x32xf32>
      %c0_27 = arith.constant 0 : index
      %c0_28 = arith.constant 0 : index
      %57 = vector.load %arg7[%c0_27, %c0_28] : memref<8x32xf32, #tpu.memory_space<vmem>>, vector<8x32xf32>
      tpu.vector_store %arg7[%c0_27, %c0_28], %56 {strides = array<i32>} : memref<8x32xf32, #tpu.memory_space<vmem>>, vector<8x32xf32>,
    } else {
    }
    %c0 = arith.constant 0 : index
    %c0_1 = arith.constant 0 : index
    %c0_2 = arith.constant 0 : index
    %3 = vector.load %arg1[%c0, %c0_1, %c0_2] : memref<1x8x1xi32, #tpu.memory_space<vmem>>, vector<1x8x1xi32>
    %4 = vector.shape_cast %3 : vector<1x8x1xi32> to vector<8x1xi32>
    %c0_3 = arith.constant 0 : index
    %c0_4 = arith.constant 0 : index
    %5 = vector.load %arg7[%c0_3, %c0_4] : memref<8x32xf32, #tpu.memory_space<vmem>>, vector<8x32xf32>
    %cst = arith.constant 1.000000e+00 : f32
    %6 = vector.broadcast %cst : f32 to vector<8x1xf32>
    %7 = tpu.iota {dimensions = array<i32: 1>} : vector<8x16xi32>
    %8 = vector.broadcast %4 : vector<8x1xi32> to vector<8x16xi32>
    %9 = arith.cmpi eq, %7, %8 : vector<8x16xi32>
    %cst_5 = arith.constant 1.000000e+00 : f32
    %cst_6 = arith.constant 0.000000e+00 : f32
    %10 = vector.broadcast %cst_5 : f32 to vector<8x16xf32>
    %11 = vector.broadcast %cst_6 : f32 to vector<8x16xf32>
    %12 = arith.select %9, %10, %11 : vector<8x16xi1>, vector<8x16xf32>
    %13 = tpu.concatenate %12, %5, %6 in 1 : vector<8x16xf32>, vector<8x32xf32>, vector<8x1xf32> -> vector<8x49xf32>
    %c0_7 = arith.constant 0 : index
    %c0_8 = arith.constant 0 : index
    %14 = vector.load %arg3[%c0_7, %c0_8] : memref<49x128xf32, #tpu.memory_space<vmem>>, vector<49x128xf32>
    %cst_9 = arith.constant dense<0.000000e+00> : vector<8x128xf32>
    %15 = tpu.matmul %13, %14, %cst_9 {dimension_numbers = #tpu.dot_dimension_numbers<[1], [0], [0], [1], [0, 0, 1, 1], [], []>} : vector<8x49xf32>, vector<49x128xf32>, vector<8x128xf32> -> vector<8x128xf32>
    %16 = vector.extract_strided_slice %15 {offsets = [0, 0], sizes = [8, 32], strides = [1, 1]} : vector<8x128xf32> to vector<8x32xf32>
    %17 = arith.negf %16 : vector<8x32xf32>
    %18 = math.exp %17 : vector<8x32xf32>
    %cst_10 = arith.constant 1.000000e+00 : f32
    %19 = vector.broadcast %cst_10 : f32 to vector<8x32xf32>
    %20 = arith.addf %19, %18 : vector<8x32xf32>
    %21 = arith.divf %19, %20 : vector<8x32xf32>
    %22 = vector.extract_strided_slice %15 {offsets = [0, 32], sizes = [8, 32], strides = [1, 1]} : vector<8x128xf32> to vector<8x32xf32>
    %23 = arith.negf %22 : vector<8x32xf32>
    %24 = math.exp %23 : vector<8x32xf32>
    %cst_11 = arith.constant 1.000000e+00 : f32
    %25 = vector.broadcast %cst_11 : f32 to vector<8x32xf32>
    %26 = arith.addf %25, %24 : vector<8x32xf32>
    %27 = arith.divf %25, %26 : vector<8x32xf32>
    %28 = vector.extract_strided_slice %15 {offsets = [0, 64], sizes = [8, 32], strides = [1, 1]} : vector<8x128xf32> to vector<8x32xf32>
    %29 = vector.extract_strided_slice %15 {offsets = [0, 96], sizes = [8, 32], strides = [1, 1]} : vector<8x128xf32> to vector<8x32xf32>
    %30 = arith.mulf %21, %29 : vector<8x32xf32>
    %31 = arith.addf %28, %30 : vector<8x32xf32>
    %32 = math.tanh %31 : vector<8x32xf32>
    %cst_12 = arith.constant 1.000000e+00 : f32
    %33 = vector.broadcast %cst_12 : f32 to vector<8x32xf32>
    %34 = arith.subf %33, %27 : vector<8x32xf32>
    %35 = arith.mulf %34, %32 : vector<8x32xf32>
    %36 = arith.mulf %27, %5 : vector<8x32xf32>
    %37 = arith.addf %35, %36 : vector<8x32xf32>
    %38 = tpu.concatenate %37, %6 in 1 : vector<8x32xf32>, vector<8x1xf32> -> vector<8x33xf32>
    %c0_13 = arith.constant 0 : index
    %c0_14 = arith.constant 0 : index
    %39 = vector.load %arg4[%c0_13, %c0_14] : memref<33x128xf32, #tpu.memory_space<vmem>>, vector<33x128xf32>
    %cst_15 = arith.constant dense<0.000000e+00> : vector<8x128xf32>
    %40 = tpu.matmul %38, %39, %cst_15 {dimension_numbers = #tpu.dot_dimension_numbers<[1], [0], [0], [1], [0, 0, 1, 1], [], []>} : vector<8x33xf32>, vector<33x128xf32>, vector<8x128xf32> -> vector<8x128xf32>
    %cst_16 = arith.constant dense<0xFF800000> : vector<8xf32>
    %41 = vector.multi_reduction <maximumf>, %40, %cst_16 [1] : vector<8x128xf32> to vector<8xf32>
    %42 = vector.shape_cast %41 : vector<8xf32> to vector<8x1xf32>
    %43 = vector.broadcast %42 : vector<8x1xf32> to vector<8x128xf32>
    %44 = arith.subf %40, %43 : vector<8x128xf32>
    %45 = math.exp %44 : vector<8x128xf32>
    %cst_17 = arith.constant dense<0.000000e+00> : vector<8xf32>
    %46 = vector.multi_reduction <add>, %45, %cst_17 [1] : vector<8x128xf32> to vector<8xf32>
    %47 = vector.shape_cast %46 : vector<8xf32> to vector<8x1xf32>
    %48 = math.log %47 : vector<8x1xf32>
    %49 = vector.broadcast %48 : vector<8x1xf32> to vector<8x128xf32>
    %50 = arith.subf %44, %49 : vector<8x128xf32>
    %c0_18 = arith.constant 0 : index
    %c0_19 = arith.constant 0 : index
    %c0_20 = arith.constant 0 : index
    %51 = vector.load %arg5[%c0_18, %c0_19, %c0_20] : memref<1x8x128xf32, #tpu.memory_space<vmem>>, vector<1x8x128xf32>
    %52 = vector.shape_cast %51 : vector<1x8x128xf32> to vector<8x128xf32>
    %53 = vector.shape_cast %50 : vector<8x128xf32> to vector<1x8x128xf32>
    tpu.vector_store %arg5[%c0_18, %c0_19, %c0_20], %53 {strides = array<i32>} : memref<1x8x128xf32, #tpu.memory_space<vmem>>, vector<1x8x128xf32>,
    %c0_21 = arith.constant 0 : index
    %c0_22 = arith.constant 0 : index
    %54 = vector.load %arg7[%c0_21, %c0_22] : memref<8x32xf32, #tpu.memory_space<vmem>>, vector<8x32xf32>
    tpu.vector_store %arg7[%c0_21, %c0_22], %37 {strides = array<i32>} : memref<8x32xf32, #tpu.memory_space<vmem>>, vector<8x32xf32>,
    %c0_23 = arith.constant 0 : index
    %c0_24 = arith.constant 0 : index
    %55 = vector.load %arg6[%c0_23, %c0_24] : memref<8x32xf32, #tpu.memory_space<vmem>>, vector<8x32xf32>
    tpu.vector_store %arg6[%c0_23, %c0_24], %37 {strides = array<i32>} : memref<8x32xf32, #tpu.memory_space<vmem>>, vector<8x32xf32>,
    return
  }
  func.func @transform_0(%arg0: i32) -> (i32, i32, i32) {
    %c0_i32 = arith.constant 0 : i32
    %c0_i32_0 = arith.constant 0 : i32
    %c0_i32_1 = arith.constant 0 : i32
    return %arg0, %c0_i32, %c0_i32_0 : i32, i32, i32
  }
  func.func @transform_1(%arg0: i32) -> (i32, i32) {
    %c0_i32 = arith.constant 0 : i32
    %c0_i32_0 = arith.constant 0 : i32
    %c0_i32_1 = arith.constant 0 : i32
    return %c0_i32, %c0_i32_0 : i32, i32
  }
  func.func @transform_2(%arg0: i32) -> (i32, i32) {
    %c0_i32 = arith.constant 0 : i32
    %c0_i32_0 = arith.constant 0 : i32
    %c0_i32_1 = arith.constant 0 : i32
    return %c0_i32, %c0_i32_0 : i32, i32
  }
  func.func @transform_3(%arg0: i32) -> (i32, i32) {
    %c0_i32 = arith.constant 0 : i32
    %c0_i32_0 = arith.constant 0 : i32
    %c0_i32_1 = arith.constant 0 : i32
    return %c0_i32, %c0_i32_0 : i32, i32
  }
  func.func @transform_4(%arg0: i32) -> (i32, i32, i32) {
    %c0_i32 = arith.constant 0 : i32
    %c0_i32_0 = arith.constant 0 : i32
    %c0_i32_1 = arith.constant 0 : i32
    return %arg0, %c0_i32, %c0_i32_0 : i32, i32, i32
  }
  func.func @transform_5(%arg0: i32) -> (i32, i32) {
    %c0_i32 = arith.constant 0 : i32
    %c0_i32_0 = arith.constant 0 : i32
    %c0_i32_1 = arith.constant 0 : i32
    return %c0_i32, %c0_i32_0 : i32, i32
  }
}

</mosaic_0001>

<bundles_post_ra>
// kernel: _forward.1
= control target key start
LH: loop header
LB: loop body
LE: loop exit
PB: predicated region body
PF: predicated region fallthrough
CT: control target
= control target key end

     0   :  { %11 = vsyncpa [#allocation4], 0  ;;  %s438_s0 = inlined_call_operand.vmem [shape: s32[1,8,1], index: 0, kind: input, shape index: {}]   ;;  %s439_s1 = inlined_call_operand.vmem [shape: f32[8,32], index: 1, kind: input, shape index: {}]   ;;  %s440_s2 = inlined_call_operand.hbm [shape: f32[49,128], index: 2, kind: input, shape index: {}]   ;;  %s441_s3 = inlined_call_operand.hbm [shape: f32[33,128], index: 3, kind: input, shape index: {}]   ;;  %s442_s4 = inlined_call_operand.hbm [shape: f32[1,8,128], index: 4, kind: output, shape index: {0}]   ;;  %s443_s5 = inlined_call_operand.hbm [shape: f32[8,32], index: 5, kind: output, shape index: {1}]  }
   0x1   :  { %12 = vsyncpa [#allocation7], 0 }
   0x2   :  { %13 = vsyncpa [#allocation5], 0 }
   0x3   :  { %14 = vsyncpa [#allocation10], 0  ;;  %s23_s20 = sshll.u32 %s440_s2, 4  ;;  %s370_s21 = smov [#allocation3]   ;;  %s24_s20 = int_to_ptr.hbm [resolvable:$true] %s23_s20 }
   0x4   :  { %s25_s22 = sshll.u32 %s370_s21, 4  ;;  %s36_s25 = sshll.u32 %s441_s3, 4  ;;  %s26_s22 = int_to_ptr.vmem [resolvable:$true] %s25_s22  ;;  %s37_s25 = int_to_ptr.hbm [resolvable:$true] %s36_s25 }
   0x5   :  { %s371_s26 = smov 128   ;;  %s372_s27 = smov 8  }
   0x6   :  { %31 = dma.hbm_to_vmem [thread:$0]  %s24_s20, 896, %s26_s22, [#allocation4], %s371_s26, %s371_s26, %s372_s27  }
   0x7   :  { %s373_s28 = smov [#allocation6]  }
   0x8   :  { %s38_s29 = sshll.u32 %s373_s28, 4  ;;  %s39_s29 = int_to_ptr.vmem [resolvable:$true] %s38_s29 }
   0x9   :  { %44 = dma.hbm_to_vmem [thread:$0]  %s37_s25, 640, %s39_s29, [#allocation7], %s371_s26, %s371_s26, %s372_s27  }
   0xa   :  { %362 = dma.done.wait [#allocation4], 896  }
   0xb   :  { %363 = vsyncadd [#allocation4], 4294966400 }
   0xc   :  { %364 = dma.done.wait [#allocation7], 640  }
   0xd   :  { %365 = vsyncadd [#allocation7], 4294966656  ;;  %v374_v0 = vmov 0   ;;  %vm58_vm0 = vcmask 261120   ;;  %vm88_vm1 = vcmask 1040384   ;;  %v60_v1 = vld [vmem:[%s438_s0] sm:$0xff]  ;;  %v62_v11 = vlaneseq }
   0xe   :  { %255 = vset.pattern.permute.xlu0 %v374_v0  ;;  %v57_v2 = vld [vmem:[%s439_s1] sm:$0xff]  ;;  %v83_v3 = vld [vmem:[#allocation3 + $0x30] sm:$0x1]  ;;  %v82_v4 = vld [vmem:[#allocation3 + $0x28] sm:$0xff]  ;;  %s375_s7 = smov 16   ;;  %vm73_vm3 = vcmask 130048  }
   0xf   :  { %65 = vperm.xlu0 %255, %v60_v1   ;;  %59 = vst.msk [vmem:[#allocation2] sm:$0xff] %vm58_vm0, %v57_v2  ;;  %238 = vmatpush.msk.msra.mxu0 %vm88_vm1, %v83_v3  ;;  %v81_v6 = vld [vmem:[#allocation3 + $0x20] sm:$0xff]  ;;  %v80_v7 = vld [vmem:[#allocation3 + $0x18] sm:$0xff]  ;;  %v79_v8 = vld [vmem:[#allocation3 + $0x10] sm:$0xff]  ;;  %v63_v13 = vand.u32 127, %v62_v11  ;;  %vm75_vm4 = vcmask 392192  }
  0x10   :  { %v78_v9 = vld [vmem:[#allocation3 + $0x8] sm:$0xff]  ;;  %v77_v10 = vld [vmem:[#allocation3] sm:$0xff]  ;;  %v376_v14 = vmov 0.0   ;;  %vm84_vm5 = vcmask 400384   ;;  %s377_s0 = smov 32   ;;  %s378_s1 = smov 64  }
  0x11   :  { %102 = vmatpush.msra.mxu0 %v82_v4  ;;  %s379_s8 = smov 96   ;;  %v163_v38 = vld [vmem:[#allocation6 + $0x20] sm:$0x1]  ;;  %v162_v39 = vld [vmem:[#allocation6 + $0x18] sm:$0xff]  ;;  %v161_v40 = vld [vmem:[#allocation6 + $0x10] sm:$0xff]  ;;  %vm164_vm10 = vcmask 269312  }
  0x12   :  { %241 = vmatpush.msk.msra.mxu1 %vm88_vm1, %v163_v38  ;;  %v160_v41 = vld [vmem:[#allocation6 + $0x8] sm:$0xff]  ;;  %v159_v48 = vld [vmem:[#allocation6] sm:$0xff]  ;;  %s380_s9 = smov [#allocation9]   ;;  %s222_s13 = sshll.u32 %s443_s5, 4  ;;  %s223_s13 = int_to_ptr.hbm [resolvable:$true] %s222_s13 }
  0x13   :  { %103 = vmatpush.msra.mxu0 %v81_v6  ;;  %s220_s10 = sshll.u32 %s380_s9, 4  ;;  %s381_s14 = smov [#allocation8]   ;;  %s221_s10 = int_to_ptr.vmem [resolvable:$true] %s220_s10 }
  0x14   :  { %183 = vmatpush.msra.mxu1 %v162_v39  ;;  %s209_s15 = sshll.u32 %s381_s14, 4  ;;  %s211_s18 = sshll.u32 %s442_s4, 4  ;;  %s210_s15 = int_to_ptr.vmem [resolvable:$true] %s209_s15  ;;  %s212_s18 = int_to_ptr.hbm [resolvable:$true] %s211_s18 }
  0x15   :  { %104 = vmatpush.msra.mxu0 %v80_v7 }
  0x16   :  { %v61_v5 = vld [vmem:[#allocation2] sm:$0xff]  ;;  %184 = vmatpush.msra.mxu1 %v161_v40 }
  0x17   :  { %70 = vrot.lane.b32.xlu0 %v61_v5, %s375_s7  ;;  %105 = vmatpush.msra.mxu0 %v79_v8 }
  0x18   :  { %185 = vmatpush.msra.mxu1 %v160_v41 }
  0x19   :  { %106 = vmatpush.msra.mxu0 %v78_v9 }
  0x1a   :  { %186 = vmatpush.msra.mxu1 %v159_v48 }
  0x1b   :  { %107 = vmatpush.msra.mxu0 %v77_v10 }
  0x81   :  { %v66_v12 = vpop.permute.xlu0 %65 }
  0x82   :  { %vm67_vm2 = vcmp.eq.s32.totalorder %v63_v13, %v66_v12 }
  0x83   :  { %v68_v15 = vsel %vm67_vm2, 1.0, %v376_v14 }
  0x89   :  { %v71_v16 = vpop.permute.xlu0 %70 }
  0x8a   :  { %v74_v17 = vsel %vm73_vm3, %v68_v15, %v71_v16 }
  0x8b   :  { %v76_v18 = vsel %vm75_vm4, %v74_v17, 1.0 }
  0x8c   :  { %239 = vmatmul.msk.f32.vlgmr.msra.gmra.mxu0 %vm84_vm5, %v76_v18 }
 0x109   :  { %v109_v19 = vpop.f32.mrf.mxu0 }
 0x10a   :  { %132 = vrot.lane.b32.xlu1 %v109_v19, %s377_s0  ;;  %v240_v20 = vmul.f32 -1.442695, %v109_v19 }
 0x10c   :  { %256 = vpow2.f32 %v240_v20 }
 0x112   :  { %v257_v21 = vpop.eup %256 }
 0x113   :  { %v115_v22 = vadd.f32 1.0, %v257_v21 }
 0x115   :  { %258 = vrcp.f32 %v115_v22  ;;  %v127_v28 = vand.u32 2147483648, %v115_v22  ;;  %vm121_vm7 = vweird.f32 %v115_v22  ;;  %v125_v29 = vand.u32 2147483647, %v115_v22 }
 0x117   :  { %v128_v31 = vor.u32 1.1754944e-38, %v127_v28  ;;  %vm126_vm9 = vcmp.eq.f32.partialorder %v125_v29, 8.507059e+37 }
 0x11b   :  { %v259_v23 = vpop.eup %258 }
 0x11c   :  { %v117_v24 = vmul.f32 %v259_v23, %v115_v22  ;;  %vm122_vm6 = vweird.f32 %v259_v23 }
 0x11d   :  { %vm123_vm8 = vmor %vm121_vm7, %vm122_vm6 }
 0x11e   :  { %v118_v25 = vsub.f32 1.0, %v117_v24 }
 0x120   :  { %v119_v26 = vmul.f32 %v259_v23, %v118_v25 }
 0x122   :  { %v120_v27 = vadd.f32 %v259_v23, %v119_v26 }
 0x124   :  { %v124_v30 = vsel %vm123_vm8, %v259_v23, %v120_v27 }
 0x125   :  { %v129_v33 = vsel %vm126_vm9, %v128_v31, %v124_v30 }
 0x126   :  { %v142_v43 = vsub.f32 1.0, %v129_v33 }
 0x17c   :  { %v133_v32 = vpop.permute.xlu1 %132 }
 0x17d   :  { %v135_v34 = vmul.f32 %v133_v32, %v129_v33 }
 0x17f   :  { %137 = vrot.lane.b32.xlu1 %v135_v34, %s378_s1 }
 0x1f1   :  { %v138_v35 = vpop.permute.xlu1 %137 }
 0x1f2   :  { %v140_v36 = vadd.f32 %v138_v35, %v109_v19 }
 0x1f4   :  { %260 = vtanh.f32 %v140_v36 }
 0x1fa   :  { %v261_v37 = vpop.eup %260 }
 0x1fb   :  { %144 = vrot.lane.b32.xlu2 %v261_v37, %s379_s8 }
 0x203   :  { %148 = vrot.lane.b32.xlu2 %v61_v5, %s377_s0 }
 0x255   :  { %v145_v42 = vpop.permute.xlu2 %144 }
 0x256   :  { %v147_v45 = vmul.f32 %v145_v42, %v142_v43 }
 0x25d   :  { %v149_v44 = vpop.permute.xlu2 %148 }
 0x25e   :  { %v151_v46 = vmul.f32 %v149_v44, %v129_v33 }
 0x260   :  { %v152_v47 = vadd.f32 %v151_v46, %v147_v45 }
 0x262   :  { %154 = vrot.lane.b32.xlu0 %v152_v47, %s379_s8 }
 0x2d4   :  { %v155_v49 = vpop.permute.xlu0 %154 }
 0x2d5   :  { %202 = vst.msk [vmem:[#allocation2] sm:$0xff] %vm58_vm0, %v155_v49  ;;  %v158_v50 = vsel %vm58_vm0, %v155_v49, 1.0 }
 0x2d6   :  { %203 = vst.msk [vmem:[#allocation9] sm:$0xff] %vm58_vm0, %v155_v49  ;;  %242 = vmatmul.msk.f32.vlgmr.msra.gmra.mxu1 %vm164_vm10, %v158_v50 }
 0x2d7   :  { %225 = dma.vmem_to_hbm [thread:$0]  %s221_s10, 128, %s223_s13, [#allocation10]  }
 0x353   :  { %v188_v51 = vpop.f32.mrf.mxu1 }
 0x354   :  { %191 = vmax.xlane.f32.xlu1 %v188_v51 }
 0x3c7   :  { %v192_v52 = vpop.xlane.xlu1 %191 }
 0x3c8   :  { %v193_v53 = vsub.f32 %v188_v51, %v192_v52 }
 0x3ca   :  { %v194_v54 = vmul.f32 1.442695, %v193_v53 }
 0x3cc   :  { %262 = vpow2.f32 %v194_v54 }
 0x3d2   :  { %v263_v55 = vpop.eup %262 }
 0x3d3   :  { %196 = vadd.xlane.f32.xlu2 %v263_v55 }
 0x446   :  { %v197_v56 = vpop.xlane.xlu2 %196 }
 0x447   :  { %264 = vlog2.f32 %v197_v56 }
 0x44d   :  { %v265_v57 = vpop.eup %264 }
 0x44e   :  { %v199_v58 = vmul.f32 0.6931472, %v265_v57 }
 0x450   :  { %v200_v59 = vsub.f32 %v193_v53, %v199_v58 }
 0x452   :  { %201 = vst [vmem:[#allocation8] sm:$0xff] %v200_v59 }
 0x453   :  { %214 = dma.vmem_to_hbm [thread:$0]  %s210_s15, 128, %s212_s18, [#allocation5]  }
 0x454   :  { %366 = dma.done.wait [#allocation5], 128  }
 0x455   :  { %367 = vsyncadd [#allocation5], 4294967168 }
 0x456   :  { %368 = dma.done.wait [#allocation10], 128  }
 0x457   :  { %369 = vsyncadd [#allocation10], 4294967168 }
 0x458   :  { %234 = vsyncpa [#allocation4], 1 }
 0x459   :  { %235 = vsyncpa [#allocation7], 1 }
 0x45a   :  { %236 = vsyncpa [#allocation5], 1 }
 0x45b   :  { %237 = vsyncpa [#allocation10], 1 }

</bundles_post_ra>
